<compile_context>
chip_gen: v7x
topology: tpu7x:2x2x1
jax: 0.10.0
libtpu: 0.0.40
codegen_flags: <defaults>
</compile_context>

<pallas_src>
import jax
import jax.numpy as jnp
from jax.experimental import pallas as pl
from jax.experimental.pallas import tpu as pltpu

INPUT_DIM = 1600
HIDDEN = 128
N_ACTIONS = 4

LANE = 128
SUBLANE = 8


def _round_up(n, m):
    return ((n + m - 1) // m) * m


def dqn_kernel(x_ref, w1_ref, b1_ref, w2_ref, b2_ref, w3_ref, b3_ref, o_ref):
    # x_ref: (tile_b, 1600) f32; w* bf16 (upcast at use); b* f32; output f32 (lane-dense 128 wide).
    x = x_ref[...]
    # layer 1 + ReLU (f32 activations, bf16-stored weights, f32 accumulation)
    h1 = jnp.dot(x, w1_ref[...].astype(jnp.float32),
                 preferred_element_type=jnp.float32)
    h1 = jnp.maximum(h1 + b1_ref[...], 0.0)
    # layer 2 + ReLU
    h2 = jnp.dot(h1, w2_ref[...].astype(jnp.float32),
                 preferred_element_type=jnp.float32)
    h2 = jnp.maximum(h2 + b2_ref[...], 0.0)
    # layer 3 (no activation)
    o = jnp.dot(h2, w3_ref[...].astype(jnp.float32),
                preferred_element_type=jnp.float32) + b3_ref[...]
    o_ref[...] = o.astype(o_ref.dtype)


def init_params(key):
    """Deterministic init mirroring nn.Linear default: U(-1/sqrt(fan_in), 1/sqrt(fan_in)).

    Weights stored as (in_features, out_features) so y = x @ W + b (== F.linear with W = W_pt.T).
    """
    ks = jax.random.split(key, 6)

    def linear(kw, kb, fan_in, fan_out):
        bound = 1.0 / jnp.sqrt(float(fan_in))
        w = jax.random.uniform(kw, (fan_in, fan_out), jnp.float32, -bound, bound)
        b = jax.random.uniform(kb, (1, fan_out), jnp.float32, -bound, bound)
        return w, b

    w1, b1 = linear(ks[0], ks[1], INPUT_DIM, HIDDEN)
    w2, b2 = linear(ks[2], ks[3], HIDDEN, HIDDEN)
    w3, b3 = linear(ks[4], ks[5], HIDDEN, N_ACTIONS)
    return (w1, b1, w2, b2, w3, b3)


def prepare_params(params):
    """One-time prep: cast weights to bf16; pad only the tiny last-layer out dim to 128 lanes."""
    w1, b1, w2, b2, w3, b3 = params
    hidden = w1.shape[1]
    n_actions = w3.shape[1]
    out_pad = _round_up(n_actions, LANE)   # 4 -> 128 (lane-dense output, no masked stores)

    w1p = w1.astype(jnp.bfloat16)                                   # (1600, 128), unpadded
    w2p = w2.astype(jnp.bfloat16)                                   # (128, 128)
    w3p = jnp.zeros((hidden, out_pad), jnp.bfloat16).at[:, :n_actions].set(
        w3.astype(jnp.bfloat16))                                    # (128, 128)
    b3p = jnp.zeros((1, out_pad), jnp.float32).at[:, :n_actions].set(b3)
    return (w1p, b1, w2p, b2, w3p, b3p), n_actions


def dqn_forward(x, prepped, n_actions):
    w1, b1, w2, b2, w3, b3 = prepped
    B, K = x.shape
    hidden = w1.shape[1]
    out_pad = w3.shape[1]

    # Largest tile (<= 512 rows) that still yields a >= 2-program grid for large
    # batches (engages both TensorCores on v7x); small batches get one >=8-row tile.
    tile_b = min(512, _round_up(pl.cdiv(B, 2), SUBLANE))
    b_pad = _round_up(B, tile_b)
    if b_pad != B:
        # Pad batch rows only (cheap, and only when needed); padded rows are sliced off below.
        x = jnp.pad(x, ((0, b_pad - B), (0, 0)))

    grid = (b_pad // tile_b,)
    out = pl.pallas_call(
        dqn_kernel,
        out_shape=jax.ShapeDtypeStruct((b_pad, out_pad), jnp.float32),
        grid=grid,
        in_specs=[
            pl.BlockSpec((tile_b, K), lambda i: (i, 0)),        # x (f32): streams over batch
            pl.BlockSpec((K, hidden), lambda i: (0, 0)),        # w1 (bf16): VMEM-resident
            pl.BlockSpec((1, hidden), lambda i: (0, 0)),        # b1 (f32): resident
            pl.BlockSpec((hidden, hidden), lambda i: (0, 0)),   # w2 (bf16): resident
            pl.BlockSpec((1, hidden), lambda i: (0, 0)),        # b2 (f32): resident
            pl.BlockSpec((hidden, out_pad), lambda i: (0, 0)),  # w3 (bf16): resident
            pl.BlockSpec((1, out_pad), lambda i: (0, 0)),       # b3 (f32): resident
        ],
        out_specs=pl.BlockSpec((tile_b, out_pad), lambda i: (i, 0)),
        compiler_params=pltpu.CompilerParams(
            dimension_semantics=("parallel",),  # shard batch tiles across TCs (v7x)
        ),
    )(x, w1, b1, w2, b2, w3, b3)

    return out[:B, :n_actions]


def dqn_reference(x, prepped, n_actions):
    """Pure-JAX reference: f32 activations, bf16-quantized weights (mirrors the kernel)."""
    w1, b1, w2, b2, w3, b3 = prepped
    w1f, w2f, w3f = (w.astype(jnp.float32) for w in (w1, w2, w3))
    h1 = jnp.maximum(x @ w1f + b1, 0.0)
    h2 = jnp.maximum(h1 @ w2f + b2, 0.0)
    o = h2 @ w3f + b3
    return o[:, :n_actions]


if __name__ == "__main__":
    key = jax.random.PRNGKey(0)
    k_param, k_x = jax.random.split(key)

    params = init_params(k_param)
    prepped, n_actions = prepare_params(params)

    batch = 8
    x = jax.random.normal(k_x, (batch, INPUT_DIM), jnp.float32)

    out = dqn_forward(x, prepped, n_actions)
    out = jax.block_until_ready(out)

    ref = dqn_reference(x, prepped, n_actions)
    assert out.shape == (batch, n_actions)
    assert jnp.allclose(out, ref, atol=2e-2, rtol=2e-2), (
        float(jnp.max(jnp.abs(out - ref))))

    print("KERNEL_OK")
</pallas_src>

<mosaic_0001>
module attributes {stable_mosaic.version = 11 : i64} {
  func.func @dqn_kernel(%arg0: i32, %arg1: memref<8x1600xf32, #tpu.memory_space<vmem>>, %arg2: memref<1600x128xbf16, #tpu.memory_space<vmem>>, %arg3: memref<1x128xf32, #tpu.memory_space<vmem>>, %arg4: memref<128x128xbf16, #tpu.memory_space<vmem>>, %arg5: memref<1x128xf32, #tpu.memory_space<vmem>>, %arg6: memref<128x128xbf16, #tpu.memory_space<vmem>>, %arg7: memref<1x128xf32, #tpu.memory_space<vmem>>, %arg8: memref<8x128xf32, #tpu.memory_space<vmem>>) attributes {dimension_semantics = [#tpu.dimension_semantics<parallel>], iteration_bounds = array<i64: 1>, scalar_prefetch = 0 : i64, scratch_operands = 0 : i64, tpu.core_type = #tpu.core_type<tc>, window_params = [{transform_indices = @transform_0, window_bounds = array<i64: 8, 1600>}, {pipeline_mode = #tpu.pipeline_mode<synchronous>, transform_indices = @transform_1, window_bounds = array<i64: 1600, 128>}, {pipeline_mode = #tpu.pipeline_mode<synchronous>, transform_indices = @transform_2, window_bounds = array<i64: 1, 128>}, {pipeline_mode = #tpu.pipeline_mode<synchronous>, transform_indices = @transform_3, window_bounds = array<i64: 128, 128>}, {pipeline_mode = #tpu.pipeline_mode<synchronous>, transform_indices = @transform_4, window_bounds = array<i64: 1, 128>}, {pipeline_mode = #tpu.pipeline_mode<synchronous>, transform_indices = @transform_5, window_bounds = array<i64: 128, 128>}, {pipeline_mode = #tpu.pipeline_mode<synchronous>, transform_indices = @transform_6, window_bounds = array<i64: 1, 128>}, {transform_indices = @transform_7, window_bounds = array<i64: 8, 128>}]} {
    %c0 = arith.constant 0 : index
    %c0_0 = arith.constant 0 : index
    %0 = vector.load %arg1[%c0, %c0_0] : memref<8x1600xf32, #tpu.memory_space<vmem>>, vector<8x1600xf32>
    %c0_1 = arith.constant 0 : index
    %c0_2 = arith.constant 0 : index
    %1 = vector.load %arg2[%c0_1, %c0_2] : memref<1600x128xbf16, #tpu.memory_space<vmem>>, vector<1600x128xbf16>
    %2 = arith.extf %1 : vector<1600x128xbf16> to vector<1600x128xf32>
    %cst = arith.constant dense<0.000000e+00> : vector<8x128xf32>
    %3 = tpu.matmul %0, %2, %cst {dimension_numbers = #tpu.dot_dimension_numbers<[1], [0], [0], [1], [0, 0, 1, 1], [], []>} : vector<8x1600xf32>, vector<1600x128xf32>, vector<8x128xf32> -> vector<8x128xf32>
    %c0_3 = arith.constant 0 : index
    %c0_4 = arith.constant 0 : index
    %4 = vector.load %arg3[%c0_3, %c0_4] : memref<1x128xf32, #tpu.memory_space<vmem>>, vector<1x128xf32>
    %5 = vector.broadcast %4 : vector<1x128xf32> to vector<8x128xf32>
    %6 = arith.addf %3, %5 : vector<8x128xf32>
    %cst_5 = arith.constant 0.000000e+00 : f32
    %7 = vector.broadcast %cst_5 : f32 to vector<8x128xf32>
    %8 = arith.maximumf %6, %7 : vector<8x128xf32>
    %c0_6 = arith.constant 0 : index
    %c0_7 = arith.constant 0 : index
    %9 = vector.load %arg4[%c0_6, %c0_7] : memref<128x128xbf16, #tpu.memory_space<vmem>>, vector<128x128xbf16>
    %10 = arith.extf %9 : vector<128x128xbf16> to vector<128x128xf32>
    %cst_8 = arith.constant dense<0.000000e+00> : vector<8x128xf32>
    %11 = tpu.matmul %8, %10, %cst_8 {dimension_numbers = #tpu.dot_dimension_numbers<[1], [0], [0], [1], [0, 0, 1, 1], [], []>} : vector<8x128xf32>, vector<128x128xf32>, vector<8x128xf32> -> vector<8x128xf32>
    %c0_9 = arith.constant 0 : index
    %c0_10 = arith.constant 0 : index
    %12 = vector.load %arg5[%c0_9, %c0_10] : memref<1x128xf32, #tpu.memory_space<vmem>>, vector<1x128xf32>
    %13 = vector.broadcast %12 : vector<1x128xf32> to vector<8x128xf32>
    %14 = arith.addf %11, %13 : vector<8x128xf32>
    %cst_11 = arith.constant 0.000000e+00 : f32
    %15 = vector.broadcast %cst_11 : f32 to vector<8x128xf32>
    %16 = arith.maximumf %14, %15 : vector<8x128xf32>
    %c0_12 = arith.constant 0 : index
    %c0_13 = arith.constant 0 : index
    %17 = vector.load %arg6[%c0_12, %c0_13] : memref<128x128xbf16, #tpu.memory_space<vmem>>, vector<128x128xbf16>
    %18 = arith.extf %17 : vector<128x128xbf16> to vector<128x128xf32>
    %cst_14 = arith.constant dense<0.000000e+00> : vector<8x128xf32>
    %19 = tpu.matmul %16, %18, %cst_14 {dimension_numbers = #tpu.dot_dimension_numbers<[1], [0], [0], [1], [0, 0, 1, 1], [], []>} : vector<8x128xf32>, vector<128x128xf32>, vector<8x128xf32> -> vector<8x128xf32>
    %c0_15 = arith.constant 0 : index
    %c0_16 = arith.constant 0 : index
    %20 = vector.load %arg7[%c0_15, %c0_16] : memref<1x128xf32, #tpu.memory_space<vmem>>, vector<1x128xf32>
    %21 = vector.broadcast %20 : vector<1x128xf32> to vector<8x128xf32>
    %22 = arith.addf %19, %21 : vector<8x128xf32>
    %c0_17 = arith.constant 0 : index
    %c0_18 = arith.constant 0 : index
    %23 = vector.load %arg8[%c0_17, %c0_18] : memref<8x128xf32, #tpu.memory_space<vmem>>, vector<8x128xf32>
    tpu.vector_store %arg8[%c0_17, %c0_18], %22 {strides = array<i32>} : memref<8x128xf32, #tpu.memory_space<vmem>>, vector<8x128xf32>,
    return
  }
  func.func @transform_0(%arg0: i32) -> (i32, i32) {
    %c0_i32 = arith.constant 0 : i32
    %c0_i32_0 = arith.constant 0 : i32
    return %arg0, %c0_i32 : i32, i32
  }
  func.func @transform_1(%arg0: i32) -> (i32, i32) {
    %c0_i32 = arith.constant 0 : i32
    %c0_i32_0 = arith.constant 0 : i32
    %c0_i32_1 = arith.constant 0 : i32
    return %c0_i32, %c0_i32_0 : i32, i32
  }
  func.func @transform_2(%arg0: i32) -> (i32, i32) {
    %c0_i32 = arith.constant 0 : i32
    %c0_i32_0 = arith.constant 0 : i32
    %c0_i32_1 = arith.constant 0 : i32
    return %c0_i32, %c0_i32_0 : i32, i32
  }
  func.func @transform_3(%arg0: i32) -> (i32, i32) {
    %c0_i32 = arith.constant 0 : i32
    %c0_i32_0 = arith.constant 0 : i32
    %c0_i32_1 = arith.constant 0 : i32
    return %c0_i32, %c0_i32_0 : i32, i32
  }
  func.func @transform_4(%arg0: i32) -> (i32, i32) {
    %c0_i32 = arith.constant 0 : i32
    %c0_i32_0 = arith.constant 0 : i32
    %c0_i32_1 = arith.constant 0 : i32
    return %c0_i32, %c0_i32_0 : i32, i32
  }
  func.func @transform_5(%arg0: i32) -> (i32, i32) {
    %c0_i32 = arith.constant 0 : i32
    %c0_i32_0 = arith.constant 0 : i32
    %c0_i32_1 = arith.constant 0 : i32
    return %c0_i32, %c0_i32_0 : i32, i32
  }
  func.func @transform_6(%arg0: i32) -> (i32, i32) {
    %c0_i32 = arith.constant 0 : i32
    %c0_i32_0 = arith.constant 0 : i32
    %c0_i32_1 = arith.constant 0 : i32
    return %c0_i32, %c0_i32_0 : i32, i32
  }
  func.func @transform_7(%arg0: i32) -> (i32, i32) {
    %c0_i32 = arith.constant 0 : i32
    %c0_i32_0 = arith.constant 0 : i32
    return %arg0, %c0_i32 : i32, i32
  }
}

</mosaic_0001>

<bundles_post_ra>
// kernel: tpu_custom_call.1
= control target key start
LH: loop header
LB: loop body
LE: loop exit
PB: predicated region body
PF: predicated region fallthrough
CT: control target
= control target key end

     0   :  { %12 = vsyncpa [#allocation3], 0  ;;  %s2686_s0 = inlined_call_operand.hbm [shape: f32[8,1600], index: 0, kind: input, shape index: {}]   ;;  %s2687_s1 = inlined_call_operand.hbm [shape: bf16[1600,128], index: 1, kind: input, shape index: {}]   ;;  %s2688_s2 = inlined_call_operand.vmem [shape: f32[1,128], index: 2, kind: input, shape index: {}]   ;;  %s2689_s3 = inlined_call_operand.hbm [shape: bf16[128,128], index: 3, kind: input, shape index: {}]   ;;  %s2690_s4 = inlined_call_operand.vmem [shape: f32[1,128], index: 4, kind: input, shape index: {}]   ;;  %s2691_s5 = inlined_call_operand.hbm [shape: bf16[128,128], index: 5, kind: input, shape index: {}]   ;;  %s2692_s6 = inlined_call_operand.vmem [shape: f32[1,128], index: 6, kind: input, shape index: {}]   ;;  %s2693_s7 = inlined_call_operand.hbm [shape: f32[8,128], index: 7, kind: output, shape index: {}]  }
   0x1   :  { %13 = vsyncpa [#allocation6], 0 }
   0x2   :  { %14 = vsyncpa [#allocation9], 0 }
   0x3   :  { %15 = vsyncpa [#allocation4], 0  ;;  %s2535_s24 = smov [#allocation5]   ;;  %s2417_s28 = scalar_lea.hbm %s2687_s1, 12800 }
   0x4   :  { %s31_s25 = sshll.u32 %s2535_s24, 4  ;;  %p2418_p0 = scmp.ne.s32.totalorder %s2687_s1, %s2417_s28  ;;  %s32_s25 = int_to_ptr.vmem [resolvable:$true] %s31_s25 }
   0x5   :  { %p2421_p1 = scmp.lt.u32.totalorder %s2417_s28, %s2687_s1 }
   0x7   :  { %p2423_p2 = pnand %p2421_p1, %p2418_p0 }
   0x9   :  { %2426 = shalt.err (!%p2423_p2)
}
   0xa   :  { %s2427_s10 = scalar_lea.vmem %s32_s25, 12800  ;;  %p2432_p4 = scmp.lt.s32.totalorder %s32_s25, %s32_s25 }
   0xb   :  { %p2428_p3 = scmp.ne.s32.totalorder %s32_s25, %s2427_s10  ;;  %p2433_p5 = scmp.lt.s32.totalorder %s2427_s10, %s2427_s10 }
   0xd   :  { %p2434_p6 = por %p2433_p5, %p2432_p4 }
   0xf   :  { %p2435_p7 = pnand %p2434_p6, %p2428_p3 }
  0x11   :  { %2438 = shalt.err (!%p2435_p7)
}
  0x12   :  { %s2536_s11 = smov 64   ;;  %s2537_s12 = smov 4  }
  0x13   :  { %37 = dma.hbm_to_vmem [thread:$0]  %s2687_s1, 12800, %s32_s25, [#allocation6], %s2536_s11, %s2536_s11, %s2537_s12  }
  0x14   :  { %s2538_s15 = smov [#allocation2]   ;;  %s2539_s17 = smov [#allocation7]  }
  0x15   :  { %s22_s16 = sshll.u32 %s2538_s15, 4  ;;  %s45_s18 = sshll.u32 %s2539_s17, 4  ;;  %s23_s16 = int_to_ptr.vmem [resolvable:$true] %s22_s16  ;;  %s46_s18 = int_to_ptr.vmem [resolvable:$true] %s45_s18 }
  0x16   :  { %s2439_s21 = scalar_lea.hbm %s2686_s0, 1664 }
  0x17   :  { %p2440_p8 = scmp.ne.s32.totalorder %s2686_s0, %s2439_s21  ;;  %p2443_p9 = scmp.lt.u32.totalorder %s2439_s21, %s2686_s0 }
  0x19   :  { %p2445_p10 = pnand %p2443_p9, %p2440_p8 }
  0x1b   :  { %2448 = shalt.err (!%p2445_p10)
}
  0x1c   :  { %s2449_s1 = scalar_lea.vmem %s23_s16, 1664  ;;  %p2454_p12 = scmp.lt.s32.totalorder %s23_s16, %s23_s16 }
  0x1d   :  { %p2450_p11 = scmp.ne.s32.totalorder %s23_s16, %s2449_s1  ;;  %p2455_p13 = scmp.lt.s32.totalorder %s2449_s1, %s2449_s1 }
  0x1f   :  { %p2456_p0 = por %p2455_p13, %p2454_p12 }
  0x21   :  { %p2457_p1 = pnand %p2456_p0, %p2450_p11 }
  0x23   :  { %2460 = shalt.err (!%p2457_p1)
}
  0x24   :  { %25 = dma.hbm_to_vmem [thread:$0]  %s2686_s0, 1664, %s23_s16, [#allocation3]  }
  0x25   :  { %s2461_s30 = scalar_lea.hbm %s2689_s3, 1024 }
  0x26   :  { %p2462_p2 = scmp.ne.s32.totalorder %s2689_s3, %s2461_s30  ;;  %p2465_p3 = scmp.lt.u32.totalorder %s2461_s30, %s2689_s3 }
  0x28   :  { %p2467_p4 = pnand %p2465_p3, %p2462_p2 }
  0x2a   :  { %2470 = shalt.err (!%p2467_p4)
}
  0x2b   :  { %s2471_s14 = scalar_lea.vmem %s46_s18, 1024  ;;  %p2476_p6 = scmp.lt.s32.totalorder %s46_s18, %s46_s18 }
  0x2c   :  { %p2472_p5 = scmp.ne.s32.totalorder %s46_s18, %s2471_s14  ;;  %p2477_p7 = scmp.lt.s32.totalorder %s2471_s14, %s2471_s14 }
  0x2e   :  { %p2478_p8 = por %p2477_p7, %p2476_p6 }
  0x30   :  { %p2479_p9 = pnand %p2478_p8, %p2472_p5 }
  0x32   :  { %2482 = shalt.err (!%p2479_p9)
}
  0x33   :  { %51 = dma.hbm_to_vmem [thread:$0]  %s2689_s3, 1024, %s46_s18, [#allocation6], %s2536_s11, %s2536_s11, %s2537_s12  }
  0x34   :  { %s2540_s16 = smov [#allocation8]   ;;  %s2483_s21 = scalar_lea.hbm %s2691_s5, 1024 }
  0x35   :  { %s59_s17 = sshll.u32 %s2540_s16, 4  ;;  %p2484_p10 = scmp.ne.s32.totalorder %s2691_s5, %s2483_s21  ;;  %s60_s17 = int_to_ptr.vmem [resolvable:$true] %s59_s17 }
  0x36   :  { %p2487_p11 = scmp.lt.u32.totalorder %s2483_s21, %s2691_s5 }
  0x38   :  { %p2489_p12 = pnand %p2487_p11, %p2484_p10 }
  0x3a   :  { %2492 = shalt.err (!%p2489_p12)
}
  0x3b   :  { %s2493_s1 = scalar_lea.vmem %s60_s17, 1024  ;;  %p2498_p0 = scmp.lt.s32.totalorder %s60_s17, %s60_s17 }
  0x3c   :  { %p2494_p13 = scmp.ne.s32.totalorder %s60_s17, %s2493_s1  ;;  %p2499_p1 = scmp.lt.s32.totalorder %s2493_s1, %s2493_s1 }
  0x3e   :  { %p2500_p2 = por %p2499_p1, %p2498_p0 }
  0x40   :  { %p2501_p3 = pnand %p2500_p2, %p2494_p13 }
  0x42   :  { %2504 = shalt.err (!%p2501_p3)
}
  0x43   :  { %65 = dma.hbm_to_vmem [thread:$0]  %s2691_s5, 1024, %s60_s17, [#allocation9], %s2536_s11, %s2536_s11, %s2537_s12  }
  0x44   :  { %2527 = dma.done.wait [#allocation3], 1664  }
  0x45   :  { %2528 = vsyncadd [#allocation3], 4294965632 }
  0x46   :  { %2529 = dma.done.wait [#allocation6], 13824  }
  0x47   :  { %2530 = vsyncadd [#allocation6], 4294953472 }
  0x48   :  { %2531 = dma.done.wait [#allocation9], 1024  }
  0x49   :  { %2532 = vsyncadd [#allocation9], 4294966272  ;;  %v1707_v0 = vld [vmem:[#allocation5 + $0x40] sm:$0xff]   ;;  %v1708_v4 = vld [vmem:[#allocation5 + $0x48] sm:$0xff]   ;;  %vm2542_vm0 = vmmov 0   ;;  %vm500_vm1 = vcmask 523264  }
  0x4a   :  { %v1237_v1 = vld [vmem:[#allocation5] sm:$0xff]   ;;  %2156 = vmatprep.subr.bf16.mxu0 %v1707_v0  ;;  %v1724_v5 = vld [vmem:[#allocation5 + $0xc8] sm:$0xff]   ;;  %v1709_v8 = vld [vmem:[#allocation5 + $0x50] sm:$0xff]   ;;  %s2544_s28 = smov [#allocation10]  }
  0x4b   :  { %v1723_v2 = vld [vmem:[#allocation5 + $0xc0] sm:$0xff]   ;;  %2158 = vmatpush3.bf16.msra.mxu0 %v1237_v1  ;;  %v1700_v6 = vld [vmem:[#allocation5 + $0x8] sm:$0xff]   ;;  %v1725_v9 = vld [vmem:[#allocation5 + $0xd0] sm:$0xff]   ;;  %s1221_s29 = sshll.u32 %s2544_s28, 4  ;;  %s1222_s29 = int_to_ptr.vmem [resolvable:$true] %s1221_s29 }
  0x4c   :  { %2188 = vmatprep.subr.bf16.mxu1 %v1723_v2  ;;  %v1715_v3 = vld [vmem:[#allocation5 + $0x80] sm:$0xff]   ;;  %2160 = vmatprep.subr.bf16.mxu0 %v1708_v4  ;;  %v1716_v7 = vld [vmem:[#allocation5 + $0x88] sm:$0xff]   ;;  %v1701_v10 = vld [vmem:[#allocation5 + $0x10] sm:$0xff]   ;;  %s2505_s30 = scalar_lea.vmem %s1222_s29, 128  ;;  %p2510_p5 = scmp.lt.s32.totalorder %s1222_s29, %s1222_s29 }
  0x4d   :  { %2190 = vmatpush3.bf16.msra.mxu1 %v1715_v3  ;;  %v1717_v11 = vld [vmem:[#allocation5 + $0x90] sm:$0xff]   ;;  %v1710_v12 = vld [vmem:[#allocation5 + $0x58] sm:$0xff]   ;;  %v81_v14 = vld [vmem:[#allocation2 + $0x8] sm:$0xff]  ;;  %p2506_p4 = scmp.ne.s32.totalorder %s1222_s29, %s2505_s30  ;;  %p2511_p6 = scmp.lt.s32.totalorder %s2505_s30, %s2505_s30 }
  0x4e   :  { %2192 = vmatprep.subr.bf16.mxu1 %v1724_v5  ;;  %v1726_v13 = vld [vmem:[#allocation5 + $0xd8] sm:$0xff]   ;;  %v83_v17 = vld [vmem:[#allocation2 + $0x18] sm:$0xff]  ;;  %v1711_v18 = vld [vmem:[#allocation5 + $0x60] sm:$0xff]   ;;  %568 = vmatprep.mubr.f32.mxu0 %v81_v14 }
  0x4f   :  { %2162 = vmatpush3.bf16.msra.mxu0 %v1700_v6  ;;  %v1702_v15 = vld [vmem:[#allocation5 + $0x18] sm:$0xff]   ;;  %v1727_v19 = vld [vmem:[#allocation5 + $0xe0] sm:$0xff]   ;;  %638 = vmatprep.mubr.f32.mxu1 %v83_v17  ;;  %v1712_v22 = vld [vmem:[#allocation5 + $0x68] sm:$0xff]   ;;  %p2512_p7 = por %p2511_p6, %p2510_p5 }
  0x50   :  { %2164 = vmatprep.subr.bf16.mxu0 %v1709_v8  ;;  %v1718_v16 = vld [vmem:[#allocation5 + $0x98] sm:$0xff]   ;;  %v1703_v20 = vld [vmem:[#allocation5 + $0x20] sm:$0xff]   ;;  %v1728_v23 = vld [vmem:[#allocation5 + $0xe8] sm:$0xff]  }
  0x51   :  { %2194 = vmatpush3.bf16.msra.mxu1 %v1716_v7  ;;  %v1719_v21 = vld [vmem:[#allocation5 + $0xa0] sm:$0xff]   ;;  %v1704_v24 = vld [vmem:[#allocation5 + $0x28] sm:$0xff]   ;;  %v1713_v26 = vld [vmem:[#allocation5 + $0x70] sm:$0xff]   ;;  %p2513_p8 = pnand %p2512_p7, %p2506_p4 }
  0x52   :  { %2196 = vmatprep.subr.bf16.mxu1 %v1725_v9  ;;  %v1720_v25 = vld [vmem:[#allocation5 + $0xa8] sm:$0xff]   ;;  %v1729_v27 = vld [vmem:[#allocation5 + $0xf0] sm:$0xff]   ;;  %v1714_v30 = vld [vmem:[#allocation5 + $0x78] sm:$0xff]  }
  0x53   :  { %2166 = vmatpush3.bf16.msra.mxu0 %v1701_v10  ;;  %v1705_v28 = vld [vmem:[#allocation5 + $0x30] sm:$0xff]   ;;  %v1730_v31 = vld [vmem:[#allocation5 + $0xf8] sm:$0xff]   ;;  %v1739_v34 = vld [vmem:[#allocation5 + $0x140] sm:$0xff]  }
  0x54   :  { %2168 = vmatprep.subr.bf16.mxu0 %v1710_v12  ;;  %v1721_v29 = vld [vmem:[#allocation5 + $0xb0] sm:$0xff]   ;;  %v1706_v32 = vld [vmem:[#allocation5 + $0x38] sm:$0xff]   ;;  %v1755_v35 = vld [vmem:[#allocation5 + $0x1c0] sm:$0xff]  }
  0x55   :  { %2198 = vmatpush3.bf16.msra.mxu1 %v1717_v11  ;;  %v1722_v33 = vld [vmem:[#allocation5 + $0xb8] sm:$0xff]   ;;  %v82_v37 = vld [vmem:[#allocation2 + $0x10] sm:$0xff]  ;;  %v1731_v38 = vld [vmem:[#allocation5 + $0x100] sm:$0xff]  }
  0x56   :  { %2200 = vmatprep.subr.bf16.mxu1 %v1726_v13  ;;  %v80_v36 = vld [vmem:[#allocation2] sm:$0xff]  ;;  %v1747_v39 = vld [vmem:[#allocation5 + $0x180] sm:$0xff]   ;;  %v1740_v40 = vld [vmem:[#allocation5 + $0x148] sm:$0xff]  }
  0x57   :  { %2170 = vmatpush3.bf16.msra.mxu0 %v1702_v15  ;;  %v1756_v41 = vld [vmem:[#allocation5 + $0x1c8] sm:$0xff]   ;;  %v85_v42 = vld [vmem:[#allocation2 + $0x28] sm:$0xff]  ;;  %v87_v43 = vld [vmem:[#allocation2 + $0x38] sm:$0xff] }
  0x58   :  { %2172 = vmatprep.subr.bf16.mxu0 %v1711_v18  ;;  %v1732_v44 = vld [vmem:[#allocation5 + $0x108] sm:$0xff]   ;;  %v1741_v46 = vld [vmem:[#allocation5 + $0x150] sm:$0xff]   ;;  %v1742_v50 = vld [vmem:[#allocation5 + $0x158] sm:$0xff]  }
  0x59   :  { %2202 = vmatpush3.bf16.msra.mxu1 %v1718_v16  ;;  %v1748_v45 = vld [vmem:[#allocation5 + $0x188] sm:$0xff]   ;;  %v1757_v47 = vld [vmem:[#allocation5 + $0x1d0] sm:$0xff]   ;;  %v1758_v51 = vld [vmem:[#allocation5 + $0x1d8] sm:$0xff]  }
  0x5a   :  { %2204 = vmatprep.subr.bf16.mxu1 %v1727_v19  ;;  %v1733_v48 = vld [vmem:[#allocation5 + $0x110] sm:$0xff]   ;;  %v1734_v52 = vld [vmem:[#allocation5 + $0x118] sm:$0xff]   ;;  %v1743_v54 = vld [vmem:[#allocation5 + $0x160] sm:$0xff]  }
  0x5b   :  { %2174 = vmatpush3.bf16.msra.mxu0 %v1703_v20  ;;  %v1749_v49 = vld [vmem:[#allocation5 + $0x190] sm:$0xff]   ;;  %v1750_v53 = vld [vmem:[#allocation5 + $0x198] sm:$0xff]   ;;  %v1759_v55 = vld [vmem:[#allocation5 + $0x1e0] sm:$0xff]  }
  0x5c   :  { %2176 = vmatprep.subr.bf16.mxu0 %v1712_v22  ;;  %v1735_v56 = vld [vmem:[#allocation5 + $0x120] sm:$0xff]   ;;  %v1744_v58 = vld [vmem:[#allocation5 + $0x168] sm:$0xff]   ;;  %v1745_v62 = vld [vmem:[#allocation5 + $0x170] sm:$0xff]  }
  0x5d   :  { %2206 = vmatpush3.bf16.msra.mxu1 %v1719_v21  ;;  %v1751_v57 = vld [vmem:[#allocation5 + $0x1a0] sm:$0xff]   ;;  %v1760_v59 = vld [vmem:[#allocation5 + $0x1e8] sm:$0xff]   ;;  %v1761_v63 = vld [vmem:[#allocation5 + $0x1f0] sm:$0xff]  }
  0x5e   :  { %2208 = vmatprep.subr.bf16.mxu1 %v1728_v23  ;;  %v1736_v60 = vld [vmem:[#allocation5 + $0x128] sm:$0xff]   ;;  %v1737_v0 = vld [vmem:[#allocation5 + $0x130] sm:$0xff]   ;;  %v1746_v2 = vld [vmem:[#allocation5 + $0x178] sm:$0xff]  }
  0x5f   :  { %2178 = vmatpush3.bf16.msra.mxu0 %v1704_v24  ;;  %v1752_v61 = vld [vmem:[#allocation5 + $0x1a8] sm:$0xff]   ;;  %v1753_v1 = vld [vmem:[#allocation5 + $0x1b0] sm:$0xff]   ;;  %v1762_v3 = vld [vmem:[#allocation5 + $0x1f8] sm:$0xff]  }
  0x60   :  { %2180 = vmatprep.subr.bf16.mxu0 %v1713_v26  ;;  %v1738_v4 = vld [vmem:[#allocation5 + $0x138] sm:$0xff]   ;;  %v1771_v6 = vld [vmem:[#allocation5 + $0x240] sm:$0xff]   ;;  %v86_v9 = vld [vmem:[#allocation2 + $0x30] sm:$0xff] }
  0x61   :  { %2210 = vmatpush3.bf16.msra.mxu1 %v1720_v25  ;;  %v1754_v5 = vld [vmem:[#allocation5 + $0x1b8] sm:$0xff]   ;;  %v1787_v7 = vld [vmem:[#allocation5 + $0x2c0] sm:$0xff]   ;;  %v1772_v12 = vld [vmem:[#allocation5 + $0x248] sm:$0xff]  }
  0x62   :  { %2212 = vmatprep.subr.bf16.mxu1 %v1729_v27  ;;  %v84_v8 = vld [vmem:[#allocation2 + $0x20] sm:$0xff]  ;;  %v1763_v10 = vld [vmem:[#allocation5 + $0x200] sm:$0xff]   ;;  %v1788_v13 = vld [vmem:[#allocation5 + $0x2c8] sm:$0xff]  }
  0x63   :  { %2182 = vmatpush3.bf16.msra.mxu0 %v1705_v28  ;;  %v1779_v11 = vld [vmem:[#allocation5 + $0x280] sm:$0xff]   ;;  %v91_v15 = vld [vmem:[#allocation2 + $0x58] sm:$0xff]  ;;  %v1764_v16 = vld [vmem:[#allocation5 + $0x208] sm:$0xff]  }
  0x64   :  { %2184 = vmatprep.subr.bf16.mxu0 %v1714_v30  ;;  %v89_v14 = vld [vmem:[#allocation2 + $0x48] sm:$0xff]  ;;  %v1780_v17 = vld [vmem:[#allocation5 + $0x288] sm:$0xff]   ;;  %v1773_v18 = vld [vmem:[#allocation5 + $0x250] sm:$0xff]  }
  0x65   :  { %2214 = vmatpush3.bf16.msra.mxu1 %v1721_v29  ;;  %v1789_v19 = vld [vmem:[#allocation5 + $0x2d0] sm:$0xff]   ;;  %v1774_v22 = vld [vmem:[#allocation5 + $0x258] sm:$0xff]   ;;  %v1775_v26 = vld [vmem:[#allocation5 + $0x260] sm:$0xff]  }
  0x66   :  { %2216 = vmatprep.subr.bf16.mxu1 %v1730_v31  ;;  %v1765_v20 = vld [vmem:[#allocation5 + $0x210] sm:$0xff]   ;;  %v1790_v23 = vld [vmem:[#allocation5 + $0x2d8] sm:$0xff]   ;;  %v1791_v27 = vld [vmem:[#allocation5 + $0x2e0] sm:$0xff]  }
  0x67   :  { %2186 = vmatpush3.bf16.msra.mxu0 %v1706_v32  ;;  %v1781_v21 = vld [vmem:[#allocation5 + $0x290] sm:$0xff]   ;;  %v1766_v24 = vld [vmem:[#allocation5 + $0x218] sm:$0xff]   ;;  %v1767_v28 = vld [vmem:[#allocation5 + $0x220] sm:$0xff]  }
  0x68   :  { %2220 = vmatprep.subr.bf16.mxu0 %v1739_v34  ;;  %v1782_v25 = vld [vmem:[#allocation5 + $0x298] sm:$0xff]   ;;  %v1783_v29 = vld [vmem:[#allocation5 + $0x2a0] sm:$0xff]   ;;  %v1776_v30 = vld [vmem:[#allocation5 + $0x268] sm:$0xff]  }
  0x69   :  { %2218 = vmatpush3.bf16.msra.mxu1 %v1722_v33  ;;  %v1792_v31 = vld [vmem:[#allocation5 + $0x2e8] sm:$0xff]   ;;  %v1777_v34 = vld [vmem:[#allocation5 + $0x270] sm:$0xff]  }
  0x6a   :  { %2252 = vmatprep.subr.bf16.mxu1 %v1755_v35  ;;  %569 = vmatmul.mubr.f32.vlgmr.msra.gmra.mrb[0].mxu0 %v80_v36  ;;  %v1768_v32 = vld [vmem:[#allocation5 + $0x228] sm:$0xff]   ;;  %v1793_v35 = vld [vmem:[#allocation5 + $0x2f0] sm:$0xff]  }
  0x6b   :  { %2222 = vmatpush3.bf16.msra.mxu0 %v1731_v38  ;;  %708 = vmatprep.mubr.f32.mxu0 %v85_v42  ;;  %v1784_v33 = vld [vmem:[#allocation5 + $0x2a8] sm:$0xff]   ;;  %v1769_v36 = vld [vmem:[#allocation5 + $0x230] sm:$0xff]   ;;  %v1778_v38 = vld [vmem:[#allocation5 + $0x278] sm:$0xff]  }
  0x6c   :  { %639 = vmatmul.mubr.f32.vlgmr.msra.gmra.mrb[0].mxu1 %v82_v37  ;;  %2224 = vmatprep.subr.bf16.mxu0 %v1740_v40  ;;  %v1785_v37 = vld [vmem:[#allocation5 + $0x2b0] sm:$0xff]   ;;  %v1770_v40 = vld [vmem:[#allocation5 + $0x238] sm:$0xff]  }
  0x6d   :  { %2254 = vmatpush3.bf16.msra.mxu1 %v1747_v39  ;;  %778 = vmatprep.mubr.f32.mxu1 %v87_v43  ;;  %v1794_v39 = vld [vmem:[#allocation5 + $0x2f8] sm:$0xff]   ;;  %v90_v43 = vld [vmem:[#allocation2 + $0x50] sm:$0xff] }
  0x6e   :  { %2256 = vmatprep.subr.bf16.mxu1 %v1756_v41  ;;  %v1786_v41 = vld [vmem:[#allocation5 + $0x2b8] sm:$0xff]  }
  0x6f   :  { %2226 = vmatpush3.bf16.msra.mxu0 %v1732_v44  ;;  %v88_v42 = vld [vmem:[#allocation2 + $0x40] sm:$0xff]  ;;  %v2541_v44 = vmov 0.0|0.0  }
  0x70   :  { %2228 = vmatprep.subr.bf16.mxu0 %v1741_v46  ;;  %v2543_v46 = vmov 0.0  }
  0x71   :  { %2258 = vmatpush3.bf16.msra.mxu1 %v1748_v45  ;;  %v1795_v45 = vld [vmem:[#allocation5 + $0x300] sm:$0xff]  }
  0x72   :  { %2260 = vmatprep.subr.bf16.mxu1 %v1757_v47  ;;  %v1796_v47 = vld [vmem:[#allocation5 + $0x308] sm:$0xff]  }
  0x73   :  { %2230 = vmatpush3.bf16.msra.mxu0 %v1733_v48  ;;  %v1797_v48 = vld [vmem:[#allocation5 + $0x310] sm:$0xff]  }
  0x74   :  { %2232 = vmatprep.subr.bf16.mxu0 %v1742_v50  ;;  %v92_v50 = vld [vmem:[#allocation2 + $0x60] sm:$0xff] }
  0x75   :  { %2262 = vmatpush3.bf16.msra.mxu1 %v1749_v49  ;;  %v1798_v49 = vld [vmem:[#allocation5 + $0x318] sm:$0xff]  }
  0x76   :  { %2264 = vmatprep.subr.bf16.mxu1 %v1758_v51  ;;  %v1637_v51 = vld [vmem:[#allocation7] sm:$0xff]  }
  0x77   :  { %2234 = vmatpush3.bf16.msra.mxu0 %v1734_v52  ;;  %v1799_v52 = vld [vmem:[#allocation7 + $0x8] sm:$0xff]  }
  0x78   :  { %2236 = vmatprep.subr.bf16.mxu0 %v1743_v54  ;;  %v1801_v54 = vld [vmem:[#allocation7 + $0x18] sm:$0xff]  }
  0x79   :  { %2266 = vmatpush3.bf16.msra.mxu1 %v1750_v53  ;;  %v1800_v53 = vld [vmem:[#allocation7 + $0x10] sm:$0xff]  }
  0x7a   :  { %2268 = vmatprep.subr.bf16.mxu1 %v1759_v55  ;;  %v1802_v55 = vld [vmem:[#allocation7 + $0x20] sm:$0xff]  }
  0x7b   :  { %2238 = vmatpush3.bf16.msra.mxu0 %v1735_v56  ;;  %v1803_v56 = vld [vmem:[#allocation7 + $0x28] sm:$0xff]  }
  0x7c   :  { %2240 = vmatprep.subr.bf16.mxu0 %v1744_v58  ;;  %v1805_v58 = vld [vmem:[#allocation7 + $0x38] sm:$0xff]  }
  0x7d   :  { %2270 = vmatpush3.bf16.msra.mxu1 %v1751_v57  ;;  %v1804_v57 = vld [vmem:[#allocation7 + $0x30] sm:$0xff]  }
  0x7e   :  { %2272 = vmatprep.subr.bf16.mxu1 %v1760_v59  ;;  %v1669_v59 = vld [vmem:[#allocation8] sm:$0xff]  }
  0x7f   :  { %2242 = vmatpush3.bf16.msra.mxu0 %v1736_v60  ;;  %v1806_v60 = vld [vmem:[#allocation8 + $0x8] sm:$0xff]  }
  0x80   :  { %2244 = vmatprep.subr.bf16.mxu0 %v1745_v62  ;;  %v1808_v62 = vld [vmem:[#allocation8 + $0x18] sm:$0xff]  }
  0x81   :  { %2274 = vmatpush3.bf16.msra.mxu1 %v1752_v61  ;;  %v1807_v61 = vld [vmem:[#allocation8 + $0x10] sm:$0xff]  }
  0x82   :  { %2276 = vmatprep.subr.bf16.mxu1 %v1761_v63  ;;  %v1809_v63 = vld [vmem:[#allocation8 + $0x20] sm:$0xff]  }
  0x83   :  { %2246 = vmatpush3.bf16.msra.mxu0 %v1737_v0  ;;  %v1810_v0 = vld [vmem:[#allocation8 + $0x28] sm:$0xff]  }
  0x84   :  { %2248 = vmatprep.subr.bf16.mxu0 %v1746_v2 }
  0x85   :  { %2278 = vmatpush3.bf16.msra.mxu1 %v1753_v1  ;;  %v1811_v1 = vld [vmem:[#allocation8 + $0x30] sm:$0xff]  }
  0x86   :  { %2280 = vmatprep.subr.bf16.mxu1 %v1762_v3 }
  0x87   :  { %2250 = vmatpush3.bf16.msra.mxu0 %v1738_v4  ;;  %v1232_v4 = vld [vmem:[%s2688_s2] ss:$0 sm:$0xff] }
  0x88   :  { %2284 = vmatprep.subr.bf16.mxu0 %v1771_v6 }
  0x89   :  { %2282 = vmatpush3.bf16.msra.mxu1 %v1754_v5 }
  0x8a   :  { %2316 = vmatprep.subr.bf16.mxu1 %v1787_v7  ;;  %709 = vmatmul.mubr.f32.vlgmr.msra.gmra.mrb[2].mxu0 %v84_v8 }
  0x8b   :  { %2286 = vmatpush3.bf16.msra.mxu0 %v1763_v10  ;;  %848 = vmatprep.mubr.f32.mxu0 %v89_v14 }
  0x8c   :  { %779 = vmatmul.mubr.f32.vlgmr.msra.gmra.mrb[2].mxu1 %v86_v9  ;;  %2288 = vmatprep.subr.bf16.mxu0 %v1772_v12 }
  0x8d   :  { %2318 = vmatpush3.bf16.msra.mxu1 %v1779_v11  ;;  %918 = vmatprep.mubr.f32.mxu1 %v91_v15 }
  0x8e   :  { %2320 = vmatprep.subr.bf16.mxu1 %v1788_v13 }
  0x8f   :  { %2290 = vmatpush3.bf16.msra.mxu0 %v1764_v16 }
  0x90   :  { %2292 = vmatprep.subr.bf16.mxu0 %v1773_v18 }
  0x91   :  { %2322 = vmatpush3.bf16.msra.mxu1 %v1780_v17 }
  0x92   :  { %2324 = vmatprep.subr.bf16.mxu1 %v1789_v19 }
  0x93   :  { %2294 = vmatpush3.bf16.msra.mxu0 %v1765_v20 }
  0x94   :  { %2296 = vmatprep.subr.bf16.mxu0 %v1774_v22 }
  0x95   :  { %2326 = vmatpush3.bf16.msra.mxu1 %v1781_v21 }
  0x96   :  { %2328 = vmatprep.subr.bf16.mxu1 %v1790_v23 }
  0x97   :  { %2298 = vmatpush3.bf16.msra.mxu0 %v1766_v24 }
  0x98   :  { %2300 = vmatprep.subr.bf16.mxu0 %v1775_v26 }
  0x99   :  { %2330 = vmatpush3.bf16.msra.mxu1 %v1782_v25 }
  0x9a   :  { %2332 = vmatprep.subr.bf16.mxu1 %v1791_v27 }
  0x9b   :  { %2302 = vmatpush3.bf16.msra.mxu0 %v1767_v28 }
  0x9c   :  { %2304 = vmatprep.subr.bf16.mxu0 %v1776_v30 }
  0x9d   :  { %2334 = vmatpush3.bf16.msra.mxu1 %v1783_v29 }
  0x9e   :  { %2336 = vmatprep.subr.bf16.mxu1 %v1792_v31  ;;  %v1812_v31 = vld [vmem:[#allocation8 + $0x38] sm:$0xff]  }
  0x9f   :  { %2306 = vmatpush3.bf16.msra.mxu0 %v1768_v32  ;;  %v1234_v32 = vld [vmem:[%s2690_s4] ss:$0 sm:$0xff] }
  0xa0   :  { %2308 = vmatprep.subr.bf16.mxu0 %v1777_v34 }
  0xa1   :  { %2338 = vmatpush3.bf16.msra.mxu1 %v1784_v33 }
  0xa2   :  { %2340 = vmatprep.subr.bf16.mxu1 %v1793_v35 }
  0xa3   :  { %2310 = vmatpush3.bf16.msra.mxu0 %v1769_v36 }
  0xa4   :  { %2312 = vmatprep.subr.bf16.mxu0 %v1778_v38 }
  0xa5   :  { %2342 = vmatpush3.bf16.msra.mxu1 %v1785_v37  ;;  %v1235_v37 = vld [vmem:[%s2692_s6] ss:$0 sm:$0xff] }
  0xa6   :  { %2344 = vmatprep.subr.bf16.mxu1 %v1794_v39 }
  0xa7   :  { %2314 = vmatpush3.bf16.msra.mxu0 %v1770_v40 }
  0xa8   :  { %2347 = vmatprep.subr.bf16.mxu0 %v2541_v44 }
  0xa9   :  { %2346 = vmatpush3.bf16.msra.mxu1 %v1786_v41 }
  0xaa   :  { %2359 = vmatprep.subr.bf16.mxu1 %v2541_v44  ;;  %849 = vmatmul.mubr.f32.vlgmr.msra.gmra.mrb[4].mxu0 %v88_v42 }
  0xab   :  { %2349 = vmatpush3.bf16.msra.mxu0 %v1795_v45  ;;  %2082 = vmatprep.mubr.msk.f32.mxu0 %vm2542_vm0, %v2543_v46 }
  0xac   :  { %919 = vmatmul.mubr.f32.vlgmr.msra.gmra.mrb[4].mxu1 %v90_v43  ;;  %2350 = vmatprep.subr.bf16.mxu0 %v2541_v44 }
  0xad   :  { %2117 = vmatprep.mubr.msk.f32.mxu1 %vm2542_vm0, %v2543_v46  ;;  %2361 = vmatpush3.bf16.msra.mxu1 %v1637_v51 }
  0xae   :  { %2362 = vmatprep.subr.bf16.mxu1 %v2541_v44 }
  0xaf   :  { %2352 = vmatpush3.bf16.msra.mxu0 %v1796_v47 }
  0xb0   :  { %2353 = vmatprep.subr.bf16.mxu0 %v2541_v44 }
  0xb1   :  { %2364 = vmatpush3.bf16.msra.mxu1 %v1799_v52 }
  0xb2   :  { %2365 = vmatprep.subr.bf16.mxu1 %v2541_v44 }
  0xb3   :  { %2355 = vmatpush3.bf16.msra.mxu0 %v1797_v48 }
  0xb4   :  { %2356 = vmatprep.subr.bf16.mxu0 %v2541_v44 }
  0xb5   :  { %2367 = vmatpush3.bf16.msra.mxu1 %v1800_v53 }
  0xb6   :  { %2368 = vmatprep.subr.bf16.mxu1 %v2541_v44 }
  0xb7   :  { %2358 = vmatpush3.bf16.msra.mxu0 %v1798_v49 }
  0xb8   :  { %2383 = vmatprep.subr.bf16.mxu0 %v2541_v44 }
  0xb9   :  { %2370 = vmatpush3.bf16.msra.mxu1 %v1801_v54 }
  0xba   :  { %2083 = vmatmul.mubr.msk.f32.vlgmr.msra.gmra.mrb[6].mxu0 %vm500_vm1, %v92_v50  ;;  %2371 = vmatprep.subr.bf16.mxu1 %v2541_v44 }
  0xbb   :  { %2152 = vmatprep.mubr.msk.f32.mxu0 %vm2542_vm0, %v2543_v46  ;;  %2385 = vmatpush3.bf16.msra.mxu0 %v1669_v59 }
  0xbc   :  { %2386 = vmatprep.subr.bf16.mxu0 %v2541_v44 }
  0xbd   :  { %2373 = vmatpush3.bf16.msra.mxu1 %v1802_v55 }
  0xbe   :  { %2374 = vmatprep.subr.bf16.mxu1 %v2541_v44 }
  0xbf   :  { %2388 = vmatpush3.bf16.msra.mxu0 %v1806_v60 }
  0xc0   :  { %2389 = vmatprep.subr.bf16.mxu0 %v2541_v44 }
  0xc1   :  { %2376 = vmatpush3.bf16.msra.mxu1 %v1803_v56 }
  0xc2   :  { %2377 = vmatprep.subr.bf16.mxu1 %v2541_v44 }
  0xc3   :  { %2391 = vmatpush3.bf16.msra.mxu0 %v1807_v61 }
  0xc4   :  { %2392 = vmatprep.subr.bf16.mxu0 %v2541_v44 }
  0xc5   :  { %2379 = vmatpush3.bf16.msra.mxu1 %v1804_v57 }
  0xc6   :  { %2380 = vmatprep.subr.bf16.mxu1 %v2541_v44 }
  0xc7   :  { %2394 = vmatpush3.bf16.msra.mxu0 %v1808_v62 }
  0xc8   :  { %2395 = vmatprep.subr.bf16.mxu0 %v2541_v44 }
  0xc9   :  { %2382 = vmatpush3.bf16.msra.mxu1 %v1805_v58 }
  0xcb   :  { %2397 = vmatpush3.bf16.msra.mxu0 %v1809_v63 }
  0xcc   :  { %2398 = vmatprep.subr.bf16.mxu0 %v2541_v44 }
  0xcf   :  { %2400 = vmatpush3.bf16.msra.mxu0 %v1810_v0 }
  0xd0   :  { %2401 = vmatprep.subr.bf16.mxu0 %v2541_v44 }
  0xd3   :  { %2403 = vmatpush3.bf16.msra.mxu0 %v1811_v1 }
  0xd4   :  { %2404 = vmatprep.subr.bf16.mxu0 %v2541_v44 }
  0xd7   :  { %2406 = vmatpush3.bf16.msra.mxu0 %v1812_v31 }
 0x13d   :  { %v1845_v2 = vpop.f32.mrb[0].mxu0 }
 0x13e   :  { %v1846_v5 = vpop.f32.mrb[1].mxu0 }
 0x13f   :  { %v1880_v3 = vpop.f32.mrb[0].mxu1  ;;  %v1847_v7 = vadd.f32 %v1846_v5, %v1845_v2 }
 0x140   :  { %v1881_v6 = vpop.f32.mrb[1].mxu1 }
 0x141   :  { %v1882_v8 = vadd.f32 %v1881_v6, %v1880_v3  ;;  %v571_v9 = vadd.f32 %v1847_v7, %v1232_v4 }
 0x143   :  { %v641_v10 = vadd.f32 %v1882_v8, %v571_v9 }
 0x15d   :  { %v1915_v11 = vpop.f32.mrb[2].mxu0 }
 0x15e   :  { %v1916_v13 = vpop.f32.mrb[3].mxu0 }
 0x15f   :  { %v1950_v12 = vpop.f32.mrb[2].mxu1  ;;  %v1917_v15 = vadd.f32 %v1916_v13, %v1915_v11 }
 0x160   :  { %v1951_v14 = vpop.f32.mrb[3].mxu1 }
 0x161   :  { %v1952_v16 = vadd.f32 %v1951_v14, %v1950_v12  ;;  %v711_v17 = vadd.f32 %v1917_v15, %v641_v10 }
 0x163   :  { %v781_v18 = vadd.f32 %v1952_v16, %v711_v17 }
 0x17d   :  { %v1985_v19 = vpop.f32.mrb[4].mxu0 }
 0x17e   :  { %v1986_v21 = vpop.f32.mrb[5].mxu0 }
 0x17f   :  { %v2020_v20 = vpop.f32.mrb[4].mxu1  ;;  %v1987_v23 = vadd.f32 %v1986_v21, %v1985_v19 }
 0x180   :  { %v2021_v22 = vpop.f32.mrb[5].mxu1 }
 0x181   :  { %v2022_v24 = vadd.f32 %v2021_v22, %v2020_v20  ;;  %v851_v25 = vadd.f32 %v1987_v23, %v781_v18 }
 0x183   :  { %v921_v26 = vadd.f32 %v2022_v24, %v851_v25 }
 0x18d   :  { %v990_v27 = vpop.f32.mrb[6].mxu0 }
 0x18e   :  { %v991_v28 = vadd.f32 %v990_v27, %v921_v26  ;;  %v2084_v29 = vpop.f32.mrb[7].mxu0 }
 0x190   :  { %v994_v30 = vmax.f32 %v991_v28, 0.0 }
 0x192   :  { %2118 = vmatmul.mubr.f32.vlgmr.msra.gmra.mrb[6].mxu1 %v994_v30 }
 0x265   :  { %v1100_v33 = vpop.f32.mrb[6].mxu1 }
 0x266   :  { %v1101_v34 = vadd.f32 %v1234_v32, %v1100_v33  ;;  %v2119_v35 = vpop.f32.mrb[7].mxu1 }
 0x268   :  { %v1104_v36 = vmax.f32 %v1101_v34, 0.0 }
 0x26a   :  { %2153 = vmatmul.mubr.f32.vlgmr.msra.gmra.mrb[8].mxu0 %v1104_v36 }
 0x33d   :  { %v1210_v38 = vpop.f32.mrb[8].mxu0 }
 0x33e   :  { %v1211_v39 = vadd.f32 %v1235_v37, %v1210_v38  ;;  %v2154_v40 = vpop.f32.mrb[9].mxu0 }
 0x340   :  { %1214 = vst [vmem:[#allocation10] sm:$0xff] %v1211_v39 }
 0x341   :  { %2516 = shalt.err (!%p2513_p8)
}
 0x342   :  { %s2517_s9 = scalar_lea.hbm %s2693_s7, 128 }
 0x343   :  { %p2518_p9 = scmp.ne.s32.totalorder %s2693_s7, %s2517_s9  ;;  %p2521_p10 = scmp.lt.u32.totalorder %s2517_s9, %s2693_s7 }
 0x345   :  { %p2523_p11 = pnand %p2521_p10, %p2518_p9 }
 0x347   :  { %2526 = shalt.err (!%p2523_p11)
}
 0x348   :  { %1224 = dma.vmem_to_hbm [thread:$0]  %s1222_s29, 128, %s2693_s7, [#allocation4]  }
 0x349   :  { %2533 = dma.done.wait [#allocation4], 128  }
 0x34a   :  { %2534 = vsyncadd [#allocation4], 4294967168 }
 0x34b   :  { %1228 = vsyncpa [#allocation3], 1 }
 0x34c   :  { %1229 = vsyncpa [#allocation6], 1 }
 0x34d   :  { %1230 = vsyncpa [#allocation9], 1 }
 0x34e   :  { %1231 = vsyncpa [#allocation4], 1 }

</bundles_post_ra>
